<compile_context>
chip_gen: v6e
topology: v6e:2x2x1
jax: 0.10.0
libtpu: 0.0.40
codegen_flags: <defaults>
</compile_context>

<pallas_src>
import math
import functools

import jax
import jax.numpy as jnp
from jax import lax
from jax.experimental import pallas as pl
from jax.experimental.pallas import tpu as pltpu


def _round_up(x, m):
    return ((x + m - 1) // m) * m


def _attn_kernel(x_ref, wqkv_ref, bqkv_ref, wo_ref, bo_ref, out_ref, *rest,
                 num_heads, valid_len, emit_probs, approx_recip):
    """One (batch, q-block) tile per grid step; heads unrolled in-kernel."""
    if emit_probs:
        probs_ref, qkv_ref, ctx_ref = rest
    else:
        qkv_ref, ctx_ref = rest

    qi = pl.program_id(1)
    cdt = qkv_ref.dtype                        # compute dtype (bf16 default)
    s_pad, three_h = qkv_ref.shape
    hidden = three_h // 3
    head_dim = hidden // num_heads
    tq = ctx_ref.shape[0]

    # Fused QKV projection for the whole (padded) sequence, once per batch.
    # The x block index is constant in qi, so x stays VMEM-resident across
    # q-blocks and this matmul only runs on the first q-block of each batch.
    @pl.when(qi == 0)
    def _():
        qkv = jnp.dot(x_ref[0], wqkv_ref[...],
                      preferred_element_type=jnp.float32) + bqkv_ref[...]
        qkv_ref[...] = qkv.astype(cdt)

    row0 = pl.multiple_of(qi * tq, tq)

    # Mask for padded key columns (statically absent when S is aligned).
    if s_pad > valid_len:
        col = lax.broadcasted_iota(jnp.int32, (tq, s_pad), 1)
        key_mask = col < valid_len
    else:
        key_mask = None

    # Heads unrolled with static column offsets: no dynamic lane slicing.
    for h in range(num_heads):
        q = qkv_ref[pl.ds(row0, tq), pl.ds(h * head_dim, head_dim)]
        k = qkv_ref[:, pl.ds(hidden + h * head_dim, head_dim)]
        v = qkv_ref[:, pl.ds(2 * hidden + h * head_dim, head_dim)]

        # scores = q @ k.T  (1/sqrt(head_dim) already folded into Wq/bq).
        scores = lax.dot_general(q, k, (((1,), (1,)), ((), ())),
                                 preferred_element_type=jnp.float32)
        if key_mask is not None:
            scores = jnp.where(key_mask, scores, -1e30)

        # Numerically-stable softmax in f32; divide -> reciprocal + multiply.
        m = jnp.max(scores, axis=-1, keepdims=True)
        e = jnp.exp(scores - m)
        denom = jnp.sum(e, axis=-1, keepdims=True)
        probs = e * pl.reciprocal(denom, approx=approx_recip)

        if emit_probs:
            probs_ref[0, h] = probs.astype(probs_ref.dtype)

        ctx = jnp.dot(probs.astype(cdt), v,
                      preferred_element_type=jnp.float32)        # (tq, hd)
        ctx_ref[:, pl.ds(h * head_dim, head_dim)] = ctx.astype(cdt)

    # Single K=H output projection for this q-block (full Wo resident).
    out = jnp.dot(ctx_ref[...], wo_ref[...],
                  preferred_element_type=jnp.float32) + bo_ref[...]
    out_ref[0] = out.astype(out_ref.dtype)


def attention_forward(x, params, num_heads, *,
                      compute_dtype=jnp.bfloat16,
                      probs_dtype=jnp.bfloat16,
                      return_probs=True,
                      q_tile=128,
                      vmem_limit_bytes=48 * 1024 * 1024):
    """x: (B, S, H). Returns (output (B,S,H), probs (B,nh,S,S) or None)."""
    B, S, H = x.shape
    assert H % num_heads == 0
    hd = H // num_heads
    out_dtype = x.dtype
    wq, bq, wk, bk, wv, bv, wo, bo = params

    # Fold 1/sqrt(head_dim) into the query projection (exact, no kernel cost).
    scale = 1.0 / math.sqrt(hd)
    wq = wq * scale
    bq = bq * scale

    # q tile + padded sequence length: multiples of 128 at real sizes for
    # lane-dense probs stores; multiples of 16 (bf16 sublane packing) when S
    # is tiny.
    if S >= q_tile:
        tq = q_tile
        s_pad = _round_up(S, tq)
    else:
        s_pad = _round_up(S, 16)
        tq = s_pad
    n_q = s_pad // tq

    if s_pad != S:
        x = jnp.pad(x, ((0, 0), (0, s_pad - S), (0, 0)))

    # Packed projection weights: columns = [Q(all heads) | K | V].
    wqkv = jnp.concatenate([wq, wk, wv], axis=1)                   # (H, 3H)
    bqkv = jnp.concatenate([bq, bk, bv]).reshape(1, 3 * H).astype(jnp.float32)
    bo2 = bo.reshape(1, H).astype(jnp.float32)

    x = x.astype(compute_dtype)
    wqkv = wqkv.astype(compute_dtype)
    wo_c = wo.astype(compute_dtype)

    emit_probs = return_probs
    kernel = functools.partial(
        _attn_kernel, num_heads=num_heads, valid_len=S,
        emit_probs=emit_probs,
        approx_recip=(compute_dtype != jnp.float32))

    out_shapes = [jax.ShapeDtypeStruct((B, s_pad, H), out_dtype)]
    out_specs = [pl.BlockSpec((1, tq, H), lambda b, qi: (b, qi, 0))]
    if emit_probs:
        out_shapes.append(
            jax.ShapeDtypeStruct((B, num_heads, s_pad, s_pad), probs_dtype))
        out_specs.append(
            pl.BlockSpec((1, num_heads, tq, s_pad), lambda b, qi: (b, 0, qi, 0)))

    results = pl.pallas_call(
        kernel,
        out_shape=tuple(out_shapes),
        grid_spec=pltpu.PrefetchScalarGridSpec(
            num_scalar_prefetch=0,
            grid=(B, n_q),
            in_specs=[
                # x resident across all q-blocks of a batch.
                pl.BlockSpec((1, s_pad, H), lambda b, qi: (b, 0, 0)),
                # Weights / biases fully VMEM-resident (constant index maps).
                pl.BlockSpec((H, 3 * H), lambda b, qi: (0, 0)),
                pl.BlockSpec((1, 3 * H), lambda b, qi: (0, 0)),
                pl.BlockSpec((H, H), lambda b, qi: (0, 0)),
                pl.BlockSpec((1, H), lambda b, qi: (0, 0)),
            ],
            out_specs=out_specs,
            scratch_shapes=[
                pltpu.VMEM((s_pad, 3 * H), compute_dtype),   # per-batch QKV
                pltpu.VMEM((tq, H), compute_dtype),          # per-q-block ctx
            ],
        ),
        compiler_params=pltpu.CompilerParams(
            # Batch axis megacore-parallel; the q axis carries the per-batch
            # QKV scratch so it must stay "arbitrary".
            dimension_semantics=("parallel", "arbitrary"),
            vmem_limit_bytes=vmem_limit_bytes),
    )(x, wqkv, bqkv, wo_c, bo2)

    if emit_probs:
        out_p, probs_p = results
    else:
        (out_p,) = results
        probs_p = None

    out = out_p[:, :S, :]
    probs = probs_p[:, :, :S, :S] if probs_p is not None else None
    return out, probs


def _reference(x, params, num_heads):
    """Pure-JAX reference mirroring the PyTorch forward (eval mode)."""
    B, S, H = x.shape
    hd = H // num_heads
    wq, bq, wk, bk, wv, bv, wo, bo = params
    q = x @ wq + bq
    k = x @ wk + bk
    v = x @ wv + bv

    def split(t):  # (B,S,H) -> (B,nh,S,hd)
        return t.reshape(B, S, num_heads, hd).transpose(0, 2, 1, 3)

    qh, kh, vh = split(q), split(k), split(v)
    scores = jnp.einsum('bnqd,bnkd->bnqk', qh, kh) / math.sqrt(hd)
    probs = jax.nn.softmax(scores, axis=-1)
    ctx = jnp.einsum('bnqk,bnkd->bnqd', probs, vh)
    ctx = ctx.transpose(0, 2, 1, 3).reshape(B, S, H)
    out = ctx @ wo + bo
    return out, probs


if __name__ == "__main__":
    # Small config consistent with the module: hidden_size=32, num_heads=4.
    B, S, H = 2, 8, 32
    NUM_HEADS = 4

    key = jax.random.PRNGKey(0)
    keys = jax.random.split(key, 10)
    x = jax.random.normal(keys[0], (B, S, H), dtype=jnp.float32)

    def init_linear(kw, kb):
        w = 0.02 * jax.random.normal(kw, (H, H), dtype=jnp.float32)
        b = 0.01 * jax.random.normal(kb, (H,), dtype=jnp.float32)
        return w, b

    wq, bq = init_linear(keys[1], keys[2])
    wk, bk = init_linear(keys[3], keys[4])
    wv, bv = init_linear(keys[5], keys[6])
    wo, bo = init_linear(keys[7], keys[8])
    params = (wq, bq, wk, bk, wv, bv, wo, bo)

    ref_out, ref_probs = _reference(x, params, NUM_HEADS)

    # f32 parity/debug path (also exercises the S=8 -> S_pad=16 padding+mask).
    out, probs = attention_forward(x, params, NUM_HEADS,
                                   compute_dtype=jnp.float32,
                                   probs_dtype=jnp.float32)
    jax.block_until_ready((out, probs))
    assert out.shape == (B, S, H) and probs.shape == (B, NUM_HEADS, S, S)
    assert jnp.allclose(out, ref_out, atol=1e-3, rtol=1e-3)
    assert jnp.allclose(probs, ref_probs, atol=1e-3, rtol=1e-3)

    # Default fast path: bf16 compute (f32 accumulation + f32 softmax),
    # bf16 probs output, approx reciprocal.
    out_bf, probs_bf = attention_forward(x, params, NUM_HEADS)
    jax.block_until_ready((out_bf, probs_bf))
    assert jnp.allclose(out_bf.astype(jnp.float32), ref_out,
                        atol=3e-2, rtol=3e-2)
    assert jnp.allclose(probs_bf.astype(jnp.float32), ref_probs,
                        atol=3e-2, rtol=3e-2)

    # Probs-skipping path (vis=False equivalent): no probs writeback at all.
    out_np, w_np = attention_forward(x, params, NUM_HEADS, return_probs=False)
    jax.block_until_ready(out_np)
    assert w_np is None
    assert jnp.allclose(out_np.astype(jnp.float32), ref_out,
                        atol=3e-2, rtol=3e-2)

    # Multi-q-block path: S=24, q_tile=8 -> 3 q-blocks per batch, exercising
    # the per-batch QKV scratch reuse across q-blocks.
    S2 = 24
    x2 = jax.random.normal(keys[9], (B, S2, H), dtype=jnp.float32)
    ref2_out, ref2_probs = _reference(x2, params, NUM_HEADS)
    out2, probs2 = attention_forward(x2, params, NUM_HEADS,
                                     compute_dtype=jnp.float32,
                                     probs_dtype=jnp.float32, q_tile=8)
    jax.block_until_ready((out2, probs2))
    assert jnp.allclose(out2, ref2_out, atol=1e-3, rtol=1e-3)
    assert jnp.allclose(probs2, ref2_probs, atol=1e-3, rtol=1e-3)

    print("KERNEL_OK")
</pallas_src>

<mosaic_0001>
module attributes {stable_mosaic.version = 11 : i64} {
  func.func @_attn_kernel(%arg0: i32, %arg1: i32, %arg2: memref<1x16x32xf32, #tpu.memory_space<vmem>>, %arg3: memref<32x96xf32, #tpu.memory_space<vmem>>, %arg4: memref<1x96xf32, #tpu.memory_space<vmem>>, %arg5: memref<32x32xf32, #tpu.memory_space<vmem>>, %arg6: memref<1x32xf32, #tpu.memory_space<vmem>>, %arg7: memref<1x16x32xf32, #tpu.memory_space<vmem>>, %arg8: memref<1x4x16x16xf32, #tpu.memory_space<vmem>>, %arg9: memref<16x96xf32, #tpu.memory_space<vmem>>, %arg10: memref<16x32xf32, #tpu.memory_space<vmem>>) attributes {dimension_semantics = [#tpu.dimension_semantics<parallel>, #tpu.dimension_semantics<arbitrary>], iteration_bounds = array<i64: 2, 1>, scalar_prefetch = 0 : i64, scratch_operands = 2 : i64, tpu.core_type = #tpu.core_type<tc>, window_params = [{transform_indices = @transform_0, window_bounds = array<i64: 1, 16, 32>}, {pipeline_mode = #tpu.pipeline_mode<synchronous>, transform_indices = @transform_1, window_bounds = array<i64: 32, 96>}, {pipeline_mode = #tpu.pipeline_mode<synchronous>, transform_indices = @transform_2, window_bounds = array<i64: 1, 96>}, {pipeline_mode = #tpu.pipeline_mode<synchronous>, transform_indices = @transform_3, window_bounds = array<i64: 32, 32>}, {pipeline_mode = #tpu.pipeline_mode<synchronous>, transform_indices = @transform_4, window_bounds = array<i64: 1, 32>}, {transform_indices = @transform_5, window_bounds = array<i64: 1, 16, 32>}, {transform_indices = @transform_6, window_bounds = array<i64: 1, 4, 16, 16>}]} {
    %c0_i32 = arith.constant 0 : i32
    %0 = arith.cmpi eq, %arg1, %c0_i32 : i32
    %1 = arith.extui %0 : i1 to i32
    %c0_i32_0 = arith.constant 0 : i32
    %2 = arith.cmpi ne, %1, %c0_i32_0 : i32
    scf.if %2 {
      %c0_59 = arith.constant 0 : index
      %c0_60 = arith.constant 0 : index
      %c0_61 = arith.constant 0 : index
      %105 = vector.load %arg2[%c0_59, %c0_60, %c0_61] : memref<1x16x32xf32, #tpu.memory_space<vmem>>, vector<1x16x32xf32>
      %106 = vector.shape_cast %105 : vector<1x16x32xf32> to vector<16x32xf32>
      %c0_62 = arith.constant 0 : index
      %c0_63 = arith.constant 0 : index
      %107 = vector.load %arg3[%c0_62, %c0_63] : memref<32x96xf32, #tpu.memory_space<vmem>>, vector<32x96xf32>
      %cst_64 = arith.constant dense<0.000000e+00> : vector<16x96xf32>
      %108 = tpu.matmul %106, %107, %cst_64 {dimension_numbers = #tpu.dot_dimension_numbers<[1], [0], [0], [1], [0, 0, 1, 1], [], []>} : vector<16x32xf32>, vector<32x96xf32>, vector<16x96xf32> -> vector<16x96xf32>
      %c0_65 = arith.constant 0 : index
      %c0_66 = arith.constant 0 : index
      %109 = vector.load %arg4[%c0_65, %c0_66] : memref<1x96xf32, #tpu.memory_space<vmem>>, vector<1x96xf32>
      %110 = vector.broadcast %109 : vector<1x96xf32> to vector<16x96xf32>
      %111 = arith.addf %108, %110 : vector<16x96xf32>
      %c0_67 = arith.constant 0 : index
      %c0_68 = arith.constant 0 : index
      %112 = vector.load %arg9[%c0_67, %c0_68] : memref<16x96xf32, #tpu.memory_space<vmem>>, vector<16x96xf32>
      tpu.vector_store %arg9[%c0_67, %c0_68], %111 {strides = array<i32>} : memref<16x96xf32, #tpu.memory_space<vmem>>, vector<16x96xf32>,
    } else {
    }
    %c16_i32 = arith.constant 16 : i32
    %3 = arith.muli %arg1, %c16_i32 : i32
    %4 = tpu.assume_multiple %3, 16 : i32
    %5 = tpu.iota {dimensions = array<i32: 1>} : vector<16x16xi32>
    %c8_i32 = arith.constant 8 : i32
    %6 = vector.broadcast %c8_i32 : i32 to vector<16x16xi32>
    %7 = arith.cmpi slt, %5, %6 : vector<16x16xi32>
    %8 = arith.index_cast %4 : i32 to index
    %c0 = arith.constant 0 : index
    %9 = vector.load %arg9[%8, %c0] : memref<16x96xf32, #tpu.memory_space<vmem>>, vector<16x8xf32>
    %c0_1 = arith.constant 0 : index
    %c32 = arith.constant 32 : index
    %10 = vector.load %arg9[%c0_1, %c32] : memref<16x96xf32, #tpu.memory_space<vmem>>, vector<16x8xf32>
    %c0_2 = arith.constant 0 : index
    %c64 = arith.constant 64 : index
    %11 = vector.load %arg9[%c0_2, %c64] : memref<16x96xf32, #tpu.memory_space<vmem>>, vector<16x8xf32>
    %cst = arith.constant dense<0.000000e+00> : vector<16x16xf32>
    %12 = tpu.matmul %9, %10, %cst {dimension_numbers = #tpu.dot_dimension_numbers<[1], [1], [0], [0], [0, 0, 1, 0], [], []>} : vector<16x8xf32>, vector<16x8xf32>, vector<16x16xf32> -> vector<16x16xf32>
    %cst_3 = arith.constant -1.000000e+30 : f32
    %13 = vector.broadcast %cst_3 : f32 to vector<16x16xf32>
    %14 = arith.select %7, %12, %13 : vector<16x16xi1>, vector<16x16xf32>
    %cst_4 = arith.constant dense<0xFF800000> : vector<16xf32>
    %15 = vector.multi_reduction <maximumf>, %14, %cst_4 [1] : vector<16x16xf32> to vector<16xf32>
    %16 = vector.shape_cast %15 : vector<16xf32> to vector<16x1xf32>
    %17 = vector.broadcast %16 : vector<16x1xf32> to vector<16x16xf32>
    %18 = arith.subf %14, %17 : vector<16x16xf32>
    %19 = math.exp %18 : vector<16x16xf32>
    %cst_5 = arith.constant dense<0.000000e+00> : vector<16xf32>
    %20 = vector.multi_reduction <add>, %19, %cst_5 [1] : vector<16x16xf32> to vector<16xf32>
    %21 = vector.shape_cast %20 : vector<16xf32> to vector<16x1xf32>
    %22 = tpu.reciprocal %21 : vector<16x1xf32> -> vector<16x1xf32>
    %23 = vector.broadcast %22 : vector<16x1xf32> to vector<16x16xf32>
    %24 = arith.mulf %19, %23 : vector<16x16xf32>
    %c0_6 = arith.constant 0 : index
    %c0_7 = arith.constant 0 : index
    %c0_8 = arith.constant 0 : index
    %c0_9 = arith.constant 0 : index
    %25 = vector.load %arg8[%c0_6, %c0_7, %c0_8, %c0_9] : memref<1x4x16x16xf32, #tpu.memory_space<vmem>>, vector<1x1x16x16xf32>
    %26 = vector.shape_cast %25 : vector<1x1x16x16xf32> to vector<16x16xf32>
    %27 = vector.shape_cast %24 : vector<16x16xf32> to vector<1x1x16x16xf32>
    tpu.vector_store %arg8[%c0_6, %c0_7, %c0_8, %c0_9], %27 {strides = array<i32>} : memref<1x4x16x16xf32, #tpu.memory_space<vmem>>, vector<1x1x16x16xf32>,
    %cst_10 = arith.constant dense<0.000000e+00> : vector<16x8xf32>
    %28 = tpu.matmul %24, %11, %cst_10 {dimension_numbers = #tpu.dot_dimension_numbers<[1], [0], [0], [1], [0, 0, 1, 1], [], []>} : vector<16x16xf32>, vector<16x8xf32>, vector<16x8xf32> -> vector<16x8xf32>
    %c0_11 = arith.constant 0 : index
    %c0_12 = arith.constant 0 : index
    %29 = vector.load %arg10[%c0_11, %c0_12] : memref<16x32xf32, #tpu.memory_space<vmem>>, vector<16x8xf32>
    tpu.vector_store %arg10[%c0_11, %c0_12], %28 {strides = array<i32>} : memref<16x32xf32, #tpu.memory_space<vmem>>, vector<16x8xf32>,
    %30 = arith.index_cast %4 : i32 to index
    %c8 = arith.constant 8 : index
    %31 = vector.load %arg9[%30, %c8] : memref<16x96xf32, #tpu.memory_space<vmem>>, vector<16x8xf32>
    %c0_13 = arith.constant 0 : index
    %c40 = arith.constant 40 : index
    %32 = vector.load %arg9[%c0_13, %c40] : memref<16x96xf32, #tpu.memory_space<vmem>>, vector<16x8xf32>
    %c0_14 = arith.constant 0 : index
    %c72 = arith.constant 72 : index
    %33 = vector.load %arg9[%c0_14, %c72] : memref<16x96xf32, #tpu.memory_space<vmem>>, vector<16x8xf32>
    %cst_15 = arith.constant dense<0.000000e+00> : vector<16x16xf32>
    %34 = tpu.matmul %31, %32, %cst_15 {dimension_numbers = #tpu.dot_dimension_numbers<[1], [1], [0], [0], [0, 0, 1, 0], [], []>} : vector<16x8xf32>, vector<16x8xf32>, vector<16x16xf32> -> vector<16x16xf32>
    %cst_16 = arith.constant -1.000000e+30 : f32
    %35 = vector.broadcast %cst_16 : f32 to vector<16x16xf32>
    %36 = arith.select %7, %34, %35 : vector<16x16xi1>, vector<16x16xf32>
    %cst_17 = arith.constant dense<0xFF800000> : vector<16xf32>
    %37 = vector.multi_reduction <maximumf>, %36, %cst_17 [1] : vector<16x16xf32> to vector<16xf32>
    %38 = vector.shape_cast %37 : vector<16xf32> to vector<16x1xf32>
    %39 = vector.broadcast %38 : vector<16x1xf32> to vector<16x16xf32>
    %40 = arith.subf %36, %39 : vector<16x16xf32>
    %41 = math.exp %40 : vector<16x16xf32>
    %cst_18 = arith.constant dense<0.000000e+00> : vector<16xf32>
    %42 = vector.multi_reduction <add>, %41, %cst_18 [1] : vector<16x16xf32> to vector<16xf32>
    %43 = vector.shape_cast %42 : vector<16xf32> to vector<16x1xf32>
    %44 = tpu.reciprocal %43 : vector<16x1xf32> -> vector<16x1xf32>
    %45 = vector.broadcast %44 : vector<16x1xf32> to vector<16x16xf32>
    %46 = arith.mulf %41, %45 : vector<16x16xf32>
    %c0_19 = arith.constant 0 : index
    %c1 = arith.constant 1 : index
    %c0_20 = arith.constant 0 : index
    %c0_21 = arith.constant 0 : index
    %47 = vector.load %arg8[%c0_19, %c1, %c0_20, %c0_21] : memref<1x4x16x16xf32, #tpu.memory_space<vmem>>, vector<1x1x16x16xf32>
    %48 = vector.shape_cast %47 : vector<1x1x16x16xf32> to vector<16x16xf32>
    %49 = vector.shape_cast %46 : vector<16x16xf32> to vector<1x1x16x16xf32>
    tpu.vector_store %arg8[%c0_19, %c1, %c0_20, %c0_21], %49 {strides = array<i32>} : memref<1x4x16x16xf32, #tpu.memory_space<vmem>>, vector<1x1x16x16xf32>,
    %cst_22 = arith.constant dense<0.000000e+00> : vector<16x8xf32>
    %50 = tpu.matmul %46, %33, %cst_22 {dimension_numbers = #tpu.dot_dimension_numbers<[1], [0], [0], [1], [0, 0, 1, 1], [], []>} : vector<16x16xf32>, vector<16x8xf32>, vector<16x8xf32> -> vector<16x8xf32>
    %c0_23 = arith.constant 0 : index
    %c8_24 = arith.constant 8 : index
    %51 = vector.load %arg10[%c0_23, %c8_24] : memref<16x32xf32, #tpu.memory_space<vmem>>, vector<16x8xf32>
    tpu.vector_store %arg10[%c0_23, %c8_24], %50 {strides = array<i32>} : memref<16x32xf32, #tpu.memory_space<vmem>>, vector<16x8xf32>,
    %52 = arith.index_cast %4 : i32 to index
    %c16 = arith.constant 16 : index
    %53 = vector.load %arg9[%52, %c16] : memref<16x96xf32, #tpu.memory_space<vmem>>, vector<16x8xf32>
    %c0_25 = arith.constant 0 : index
    %c48 = arith.constant 48 : index
    %54 = vector.load %arg9[%c0_25, %c48] : memref<16x96xf32, #tpu.memory_space<vmem>>, vector<16x8xf32>
    %c0_26 = arith.constant 0 : index
    %c80 = arith.constant 80 : index
    %55 = vector.load %arg9[%c0_26, %c80] : memref<16x96xf32, #tpu.memory_space<vmem>>, vector<16x8xf32>
    %cst_27 = arith.constant dense<0.000000e+00> : vector<16x16xf32>
    %56 = tpu.matmul %53, %54, %cst_27 {dimension_numbers = #tpu.dot_dimension_numbers<[1], [1], [0], [0], [0, 0, 1, 0], [], []>} : vector<16x8xf32>, vector<16x8xf32>, vector<16x16xf32> -> vector<16x16xf32>
    %cst_28 = arith.constant -1.000000e+30 : f32
    %57 = vector.broadcast %cst_28 : f32 to vector<16x16xf32>
    %58 = arith.select %7, %56, %57 : vector<16x16xi1>, vector<16x16xf32>
    %cst_29 = arith.constant dense<0xFF800000> : vector<16xf32>
    %59 = vector.multi_reduction <maximumf>, %58, %cst_29 [1] : vector<16x16xf32> to vector<16xf32>
    %60 = vector.shape_cast %59 : vector<16xf32> to vector<16x1xf32>
    %61 = vector.broadcast %60 : vector<16x1xf32> to vector<16x16xf32>
    %62 = arith.subf %58, %61 : vector<16x16xf32>
    %63 = math.exp %62 : vector<16x16xf32>
    %cst_30 = arith.constant dense<0.000000e+00> : vector<16xf32>
    %64 = vector.multi_reduction <add>, %63, %cst_30 [1] : vector<16x16xf32> to vector<16xf32>
    %65 = vector.shape_cast %64 : vector<16xf32> to vector<16x1xf32>
    %66 = tpu.reciprocal %65 : vector<16x1xf32> -> vector<16x1xf32>
    %67 = vector.broadcast %66 : vector<16x1xf32> to vector<16x16xf32>
    %68 = arith.mulf %63, %67 : vector<16x16xf32>
    %c0_31 = arith.constant 0 : index
    %c2 = arith.constant 2 : index
    %c0_32 = arith.constant 0 : index
    %c0_33 = arith.constant 0 : index
    %69 = vector.load %arg8[%c0_31, %c2, %c0_32, %c0_33] : memref<1x4x16x16xf32, #tpu.memory_space<vmem>>, vector<1x1x16x16xf32>
    %70 = vector.shape_cast %69 : vector<1x1x16x16xf32> to vector<16x16xf32>
    %71 = vector.shape_cast %68 : vector<16x16xf32> to vector<1x1x16x16xf32>
    tpu.vector_store %arg8[%c0_31, %c2, %c0_32, %c0_33], %71 {strides = array<i32>} : memref<1x4x16x16xf32, #tpu.memory_space<vmem>>, vector<1x1x16x16xf32>,
    %cst_34 = arith.constant dense<0.000000e+00> : vector<16x8xf32>
    %72 = tpu.matmul %68, %55, %cst_34 {dimension_numbers = #tpu.dot_dimension_numbers<[1], [0], [0], [1], [0, 0, 1, 1], [], []>} : vector<16x16xf32>, vector<16x8xf32>, vector<16x8xf32> -> vector<16x8xf32>
    %c0_35 = arith.constant 0 : index
    %c16_36 = arith.constant 16 : index
    %73 = vector.load %arg10[%c0_35, %c16_36] : memref<16x32xf32, #tpu.memory_space<vmem>>, vector<16x8xf32>
    tpu.vector_store %arg10[%c0_35, %c16_36], %72 {strides = array<i32>} : memref<16x32xf32, #tpu.memory_space<vmem>>, vector<16x8xf32>,
    %74 = arith.index_cast %4 : i32 to index
    %c24 = arith.constant 24 : index
    %75 = vector.load %arg9[%74, %c24] : memref<16x96xf32, #tpu.memory_space<vmem>>, vector<16x8xf32>
    %c0_37 = arith.constant 0 : index
    %c56 = arith.constant 56 : index
    %76 = vector.load %arg9[%c0_37, %c56] : memref<16x96xf32, #tpu.memory_space<vmem>>, vector<16x8xf32>
    %c0_38 = arith.constant 0 : index
    %c88 = arith.constant 88 : index
    %77 = vector.load %arg9[%c0_38, %c88] : memref<16x96xf32, #tpu.memory_space<vmem>>, vector<16x8xf32>
    %cst_39 = arith.constant dense<0.000000e+00> : vector<16x16xf32>
    %78 = tpu.matmul %75, %76, %cst_39 {dimension_numbers = #tpu.dot_dimension_numbers<[1], [1], [0], [0], [0, 0, 1, 0], [], []>} : vector<16x8xf32>, vector<16x8xf32>, vector<16x16xf32> -> vector<16x16xf32>
    %cst_40 = arith.constant -1.000000e+30 : f32
    %79 = vector.broadcast %cst_40 : f32 to vector<16x16xf32>
    %80 = arith.select %7, %78, %79 : vector<16x16xi1>, vector<16x16xf32>
    %cst_41 = arith.constant dense<0xFF800000> : vector<16xf32>
    %81 = vector.multi_reduction <maximumf>, %80, %cst_41 [1] : vector<16x16xf32> to vector<16xf32>
    %82 = vector.shape_cast %81 : vector<16xf32> to vector<16x1xf32>
    %83 = vector.broadcast %82 : vector<16x1xf32> to vector<16x16xf32>
    %84 = arith.subf %80, %83 : vector<16x16xf32>
    %85 = math.exp %84 : vector<16x16xf32>
    %cst_42 = arith.constant dense<0.000000e+00> : vector<16xf32>
    %86 = vector.multi_reduction <add>, %85, %cst_42 [1] : vector<16x16xf32> to vector<16xf32>
    %87 = vector.shape_cast %86 : vector<16xf32> to vector<16x1xf32>
    %88 = tpu.reciprocal %87 : vector<16x1xf32> -> vector<16x1xf32>
    %89 = vector.broadcast %88 : vector<16x1xf32> to vector<16x16xf32>
    %90 = arith.mulf %85, %89 : vector<16x16xf32>
    %c0_43 = arith.constant 0 : index
    %c3 = arith.constant 3 : index
    %c0_44 = arith.constant 0 : index
    %c0_45 = arith.constant 0 : index
    %91 = vector.load %arg8[%c0_43, %c3, %c0_44, %c0_45] : memref<1x4x16x16xf32, #tpu.memory_space<vmem>>, vector<1x1x16x16xf32>
    %92 = vector.shape_cast %91 : vector<1x1x16x16xf32> to vector<16x16xf32>
    %93 = vector.shape_cast %90 : vector<16x16xf32> to vector<1x1x16x16xf32>
    tpu.vector_store %arg8[%c0_43, %c3, %c0_44, %c0_45], %93 {strides = array<i32>} : memref<1x4x16x16xf32, #tpu.memory_space<vmem>>, vector<1x1x16x16xf32>,
    %cst_46 = arith.constant dense<0.000000e+00> : vector<16x8xf32>
    %94 = tpu.matmul %90, %77, %cst_46 {dimension_numbers = #tpu.dot_dimension_numbers<[1], [0], [0], [1], [0, 0, 1, 1], [], []>} : vector<16x16xf32>, vector<16x8xf32>, vector<16x8xf32> -> vector<16x8xf32>
    %c0_47 = arith.constant 0 : index
    %c24_48 = arith.constant 24 : index
    %95 = vector.load %arg10[%c0_47, %c24_48] : memref<16x32xf32, #tpu.memory_space<vmem>>, vector<16x8xf32>
    tpu.vector_store %arg10[%c0_47, %c24_48], %94 {strides = array<i32>} : memref<16x32xf32, #tpu.memory_space<vmem>>, vector<16x8xf32>,
    %c0_49 = arith.constant 0 : index
    %c0_50 = arith.constant 0 : index
    %96 = vector.load %arg10[%c0_49, %c0_50] : memref<16x32xf32, #tpu.memory_space<vmem>>, vector<16x32xf32>
    %c0_51 = arith.constant 0 : index
    %c0_52 = arith.constant 0 : index
    %97 = vector.load %arg5[%c0_51, %c0_52] : memref<32x32xf32, #tpu.memory_space<vmem>>, vector<32x32xf32>
    %cst_53 = arith.constant dense<0.000000e+00> : vector<16x32xf32>
    %98 = tpu.matmul %96, %97, %cst_53 {dimension_numbers = #tpu.dot_dimension_numbers<[1], [0], [0], [1], [0, 0, 1, 1], [], []>} : vector<16x32xf32>, vector<32x32xf32>, vector<16x32xf32> -> vector<16x32xf32>
    %c0_54 = arith.constant 0 : index
    %c0_55 = arith.constant 0 : index
    %99 = vector.load %arg6[%c0_54, %c0_55] : memref<1x32xf32, #tpu.memory_space<vmem>>, vector<1x32xf32>
    %100 = vector.broadcast %99 : vector<1x32xf32> to vector<16x32xf32>
    %101 = arith.addf %98, %100 : vector<16x32xf32>
    %c0_56 = arith.constant 0 : index
    %c0_57 = arith.constant 0 : index
    %c0_58 = arith.constant 0 : index
    %102 = vector.load %arg7[%c0_56, %c0_57, %c0_58] : memref<1x16x32xf32, #tpu.memory_space<vmem>>, vector<1x16x32xf32>
    %103 = vector.shape_cast %102 : vector<1x16x32xf32> to vector<16x32xf32>
    %104 = vector.shape_cast %101 : vector<16x32xf32> to vector<1x16x32xf32>
    tpu.vector_store %arg7[%c0_56, %c0_57, %c0_58], %104 {strides = array<i32>} : memref<1x16x32xf32, #tpu.memory_space<vmem>>, vector<1x16x32xf32>,
    return
  }
  func.func @transform_0(%arg0: i32, %arg1: i32) -> (i32, i32, i32) {
    %c0_i32 = arith.constant 0 : i32
    %c0_i32_0 = arith.constant 0 : i32
    %c0_i32_1 = arith.constant 0 : i32
    return %arg0, %c0_i32, %c0_i32_0 : i32, i32, i32
  }
  func.func @transform_1(%arg0: i32, %arg1: i32) -> (i32, i32) {
    %c0_i32 = arith.constant 0 : i32
    %c0_i32_0 = arith.constant 0 : i32
    %c0_i32_1 = arith.constant 0 : i32
    return %c0_i32, %c0_i32_0 : i32, i32
  }
  func.func @transform_2(%arg0: i32, %arg1: i32) -> (i32, i32) {
    %c0_i32 = arith.constant 0 : i32
    %c0_i32_0 = arith.constant 0 : i32
    %c0_i32_1 = arith.constant 0 : i32
    return %c0_i32, %c0_i32_0 : i32, i32
  }
  func.func @transform_3(%arg0: i32, %arg1: i32) -> (i32, i32) {
    %c0_i32 = arith.constant 0 : i32
    %c0_i32_0 = arith.constant 0 : i32
    %c0_i32_1 = arith.constant 0 : i32
    return %c0_i32, %c0_i32_0 : i32, i32
  }
  func.func @transform_4(%arg0: i32, %arg1: i32) -> (i32, i32) {
    %c0_i32 = arith.constant 0 : i32
    %c0_i32_0 = arith.constant 0 : i32
    %c0_i32_1 = arith.constant 0 : i32
    return %c0_i32, %c0_i32_0 : i32, i32
  }
  func.func @transform_5(%arg0: i32, %arg1: i32) -> (i32, i32, i32) {
    %c0_i32 = arith.constant 0 : i32
    %c0_i32_0 = arith.constant 0 : i32
    return %arg0, %arg1, %c0_i32 : i32, i32, i32
  }
  func.func @transform_6(%arg0: i32, %arg1: i32) -> (i32, i32, i32, i32) {
    %c0_i32 = arith.constant 0 : i32
    %c0_i32_0 = arith.constant 0 : i32
    %c0_i32_1 = arith.constant 0 : i32
    return %arg0, %c0_i32, %arg1, %c0_i32_0 : i32, i32, i32, i32
  }
}

</mosaic_0001>

<bundles_post_ra>
// kernel: tpu_custom_call.1
= control target key start
LH: loop header
LB: loop body
LE: loop exit
PB: predicated region body
PF: predicated region fallthrough
CT: control target
= control target key end

     0   :  { %s2546_s0 = inlined_call_operand.hbm [shape: f32[2,16,32], index: 0, kind: input, shape index: {}]   ;;  %s2547_s1 = inlined_call_operand.hbm [shape: f32[32,96], index: 1, kind: input, shape index: {}]   ;;  %s2548_s2 = inlined_call_operand.vmem [shape: f32[1,96], index: 2, kind: input, shape index: {}]   ;;  %s2549_s3 = inlined_call_operand.hbm [shape: f32[32,32], index: 3, kind: input, shape index: {}]   ;;  %s2550_s4 = inlined_call_operand.vmem [shape: f32[1,32], index: 4, kind: input, shape index: {}]   ;;  %s2551_s5 = inlined_call_operand.hbm [shape: f32[2,16,32], index: 5, kind: output, shape index: {0}]   ;;  %s2552_s6 = inlined_call_operand.hbm [shape: f32[2,4,16,16], index: 6, kind: output, shape index: {1}]  }
   0x1   :  { %2555 = sst [smem:[#allocation17_spill]] %s2547_s1 }
   0x2   :  { %2556 = sst [smem:[#allocation18_spill]] %s2549_s3 }
   0x3   :  { %12 = vsyncpa [#allocation5], 0 }
   0x4   :  { %14 = vsyncpa [#allocation5 + $0x1], 0 }
   0x5   :  { %15 = vsyncpa [#allocation8], 0 }
   0x6   :  { %16 = vsyncpa [#allocation6], 0 }
   0x7   :  { %18 = vsyncpa [#allocation6 + $0x1], 0 }
   0x8   :  { %19 = vsyncpa [#allocation12], 0 }
   0x9   :  { %21 = vsyncpa [#allocation12 + $0x1], 0  ;;  %s2169_s21 = smov 0   ;;  %s2171_s22 = smov 0  }
   0xa   :  { %s2173_s23 = smov 0   ;;  %s2175_s24 = smov 0  }
   0xb   :  { %s2177_s25 = smov 0   ;;  %s2179_s26 = smov 0  }
   0xc LB: > { %s1595_s27 = sadd.s32 4294967295, %s2110_s26   ;;  %s1596_s28 = sadd.s32 4294967294, %s2110_s26   ;;  %s2110_s26 = sphi %s2179_s26, %s27_s26   ;;  %s2106_s25 = sphi %s2177_s25, %s2575_s25   ;;  %s2102_s24 = sphi %s2175_s24, %s2574_s24   ;;  %s2098_s23 = sphi %s2173_s23, %s2573_s23   ;;  %s2094_s22 = sphi %s2171_s22, %s2572_s22   ;;  %s2090_s21 = sphi %s2169_s21, %s2571_s21  }
   0xd   : > { %p59_p0 = scmp.ne.s32.totalorder %s2094_s22, %s2090_s21  ;;  %p2203_p1 = scmp.eq.s32.totalorder %s1595_s27, 0 }
   0xe   : > { %p2207_p2 = scmp.eq.s32.totalorder %s1595_s27, 1  ;;  %p175_p3 = scmp.eq.s32.totalorder %s1596_s28, 1 }
   0xf   : > { %p2213_p4 = por %p2203_p1, %p59_p0  ;;  %p1597_p5 = scmp.ge.s32.totalorder %s2110_s26, 1 }
  0x10   : > { %p2218_p6 = por %p175_p3, %p59_p0  ;;  %p210_p7 = scmp.lt.s32.totalorder %s2110_s26, 3 }
  0x11   : > { %s2112_s10 = smov [#allocation7]   ;;  %s2113_s13 = smov [#allocation9]  }
  0x12   : > { %s2560_s8 = scalar_select %p2218_p6, 1, 0 }
  0x13   : > { %p2223_p8 = pnand %p1597_p5, %p210_p7  ;;  %s222_s11 = sshll.u32 %s2112_s10, 4  ;;  %s223_s11 = int_to_ptr.vmem [resolvable:$true] %s222_s11 }
  0x14   : > { %s238_s14 = sshll.u32 %s2113_s13, 4  ;;  %s1927_s15 = scalar_lea.vmem %s223_s11, 512  ;;  %s239_s14 = int_to_ptr.vmem [resolvable:$true] %s238_s14 }
  0x15   : > { %p1793_p9 = pneg %p2223_p8  ;;  %p1928_p13 = scmp.ne.s32.totalorder %s223_s11, %s1927_s15 }
  0x16   : > { %p1935_p5 = scmp.lt.s32.totalorder %s223_s11, %s223_s11  ;;  %p1936_p7 = scmp.lt.s32.totalorder %s1927_s15, %s1927_s15 }
  0x17   : > { %p2232_p11 = pnand %p1793_p9, %p2203_p1 }
  0x18   : > { %p1937_p10 = por %p1936_p7, %p1935_p5 }
  0x19   : > { %p1918_p12 = pneg %p2232_p11 }
  0x1b   : > { %p1930_p0 = pnand %p1928_p13, %p1918_p12 }
  0x1d   : > { %p1931_p3 = pneg %p1930_p0 }
  0x1f   : > { %p1938_p9 = pnand %p1937_p10, %p1931_p3 }
  0x21   : > { %1941 = shalt.err (!%p1938_p9)
}
  0x22   : > { %s2553_s16 = smov 128   ;;  %s2554_s17 = smov 8  }
  0x23   : > { %s2563_s1 = sld [smem:[#allocation17_spill]]  ;;  %s1953_s20 = scalar_lea.vmem %s239_s14, 512 }
  0x24   : > { %p1954_p13 = scmp.ne.s32.totalorder %s239_s14, %s1953_s20  ;;  %p1961_p10 = scmp.lt.s32.totalorder %s239_s14, %s239_s14 }
  0x25   : > { %p1962_p3 = scmp.lt.s32.totalorder %s1953_s20, %s1953_s20 }
  0x26   : > { %p1956_p0 = pnand %p1954_p13, %p1918_p12 }
  0x27   : > { %p1963_p7 = por %p1962_p3, %p1961_p10 }
  0x28   : > { %p1957_p5 = pneg %p1956_p0 }
  0x29   : > { %1796 = dma.hbm_to_vmem [thread:$0]  (!%p2232_p11), %s2563_s1, 512, %s223_s11, [#allocation8], %s2553_s16, %s2553_s16, %s2554_s17  }
  0x2a   : > { %p1964_p9 = pnand %p1963_p7, %p1957_p5 }
  0x2c   : > { %1967 = shalt.err (!%p1964_p9)
}
  0x2d   : > { %s2564_s3 = sld [smem:[#allocation18_spill]]  ;;  %s39_s10 = sadd.s32 1, %s2106_s25 }
  0x2e   : > { %s46_s11 = sadd.s32 1, %s2098_s23  ;;  %p41_p12 = scmp.ge.s32.totalorder %s39_s10, 2 }
  0x2f   : > { %p53_p13 = scmp.ne.s32.totalorder %s2098_s23, %s2094_s22  ;;  %p54_p0 = scmp.eq.s32.totalorder %s2110_s26, 0 }
  0x30   : > { %p1813_p5 = scmp.lt.s32.totalorder %s2110_s26, 2  ;;  %s2577_s10 = smov (%p41_p12, %s39_s10), 0 }
  0x31   : > { %p55_p10 = por %p54_p0, %p53_p13  ;;  %p2270_p3 = por %p2207_p2, %p53_p13 }
  0x32   : > { %s43_s13 = ssub.s32 %s2106_s25, %s2577_s10  ;;  %s255_s15 = sand.u32 1, %s2098_s23  }
  0x33   : > { %1799 = dma.hbm_to_vmem [thread:$0]  (!%p2232_p11), %s2564_s3, 512, %s239_s14, [#allocation8], %s2553_s16, %s2553_s16, %s2554_s17  }
  0x34   : > { %p44_p7 = scmp.eq.s32.totalorder %s43_s13, 0  ;;  %s1601_s14 = sshll.u32 %s255_s15, 4 }
  0x35   : > { %s1654_s18 = sshll.u32 %s2106_s25, 8  ;;  %s259_s16 = scalar_lea.vmem [#allocation4], %s1601_s14 }
  0x36   : > { %s2279_s19 = scalar_select %p44_p7, %s2098_s23, %s46_s11  }
  0x37   : > { %s265_s28 = scalar_lea.hbm %s2546_s0, %s1654_s18  ;;  %s266_s17 = sshll.u32 %s259_s16, 4  ;;  %s267_s17 = int_to_ptr.vmem [resolvable:$true] %s266_s17 }
  0x38   : > { %p2286_p11 = pnand %p1813_p5, %p55_p10  ;;  %s256_s1 = scalar_lea.sflag [#allocation5], %s255_s15 }
  0x39   : > { %s1981_s13 = scalar_lea.vmem %s267_s17, 256  ;;  %s2116_s11 = smov [#allocation4]  }
  0x3a   : > { %p1970_p2 = pneg %p2286_p11  ;;  %p1982_p9 = scmp.ne.s32.totalorder %s267_s17, %s1981_s13 }
  0x3b   : > { %s1986_s3 = sshll.u32 %s2116_s11, 4  ;;  %s1987_s3 = int_to_ptr.vmem [resolvable:$false] %s1986_s3 }
  0x3c   : > { %p1984_p12 = pnand %p1982_p9, %p1970_p2  ;;  %s1988_s18 = scalar_lea.vmem %s1987_s3, 512 }
  0x3d   : > { %p1989_p0 = scmp.lt.s32.totalorder %s267_s17, %s1987_s3  ;;  %p1990_p7 = scmp.lt.s32.totalorder %s1988_s18, %s1981_s13 }
  0x3e   : > { %p1985_p13 = pneg %p1984_p12 }
  0x3f   : > { %p1991_p6 = por %p1990_p7, %p1989_p0 }
  0x41   : > { %p1992_p5 = pnand %p1991_p6, %p1985_p13 }
  0x43   : > { %1995 = shalt.err (!%p1992_p5)
}
  0x44   : > { %s2567_s16 = smov 8   ;;  %s2568_s14 = smov 128  }
  0x45   : > { %1803 = dma.hbm_to_vmem [thread:$0]  (!%p2286_p11), %s265_s28, 256, %s267_s17, %s256_s1, %s2568_s14, %s2568_s14, %s2567_s16  }
  0x46   : > { %278 = sbr.rel (%p2223_p8) target bundleno = 3011 (0xbc3), region = 40  ;;  %s2300_s15 = sand.u32 (!%p2223_p8), 1, %s2094_s22  }
  0x47   : > { %s1605_s3 = sshll.u32 (!%p2223_p8), %s2300_s15, 4  ;;  %s281_s20 = scalar_lea.sflag (!%p2223_p8), [#allocation5], %s2300_s15 }
  0x48   : > { %s284_s27 = scalar_lea.vmem (!%p2223_p8), [#allocation4], %s1605_s3 }
  0x4b   : > { %2073 = dma.done.wait (%p2213_p4), %s281_s20, 256  }
  0x4c   : > { %2075 = vsyncadd (%p2213_p4), %s281_s20, 4294967040 }
  0x4d   : > { %2077 = dma.done.wait (%p2203_p1), [#allocation8], 1024  }
  0x4e   : > { %2079 = vsyncadd (%p2203_p1), [#allocation8], 4294966272  ;;  %vm345_vm0 = vcmask 261120   ;;  %v337_v0 = vld [vmem:[#allocation7 + $0x18] sm:$0xff]  ;;  %v336_v1 = vld [vmem:[#allocation7 + $0x10] sm:$0xff]  ;;  %vm427_vm1 = vcmask 785408   ;;  %v431_v15 = vlaneseq }
  0x4f   : > { %1701 = vmatprep.subr.mxu0 %v337_v0  ;;  %v332_v2 = vld [vmem:[%s284_s27] sm:$0xff]  ;;  %v335_v3 = vld [vmem:[#allocation7 + $0x8] sm:$0xff]  ;;  %vm445_vm2 = vcmask 64512   ;;  %s2117_s7 = smov 96   ;;  %vm533_vm4 = vcmask 130048   ;;  %s2118_s9 = smov 64  }
  0x50   : > { %1702 = vmatpush3.msra.mxu0 %v337_v0  ;;  %1709 = vmatprep.mubr.msk.f32.mxu0 %vm345_vm0, %v332_v2  ;;  %v334_v4 = vld [vmem:[#allocation7] sm:$0xff]  ;;  %v333_v5 = vld [vmem:[%s284_s27 + $0x8] sm:$0xff]  ;;  %v2333_v16 = vand.u32 127, %v431_v15  ;;  %s2119_s17 = smov 120   ;;  %s2120_s28 = smov 88   ;;  %vm868_vm5 = vcmask 130112  }
  0x51   : > { %1703 = vmatprep.subr.mxu0 %v336_v1  ;;  %v1610_v6 = vld [vmem:[%s2548_s2] ss:$0 sm:$0xff]  ;;  %s1609_s30 = sshll.u32 %s2300_s15, 6  ;;  %s2121_s11 = smov 56   ;;  %vm1092_vm6 = vcmask 195712   ;;  %vm1316_vm7 = vcmask 261312  }
  0x52   : > { %1704 = vmatpush3.msra.mxu0 %v336_v1  ;;  %vm433_vm3 = vcmp.lt.s32.totalorder %v2333_v16, 8  ;;  %s2351_s13 = scalar_lea.vmem [#allocation11], %s1609_s30  ;;  %s2122_s18 = smov 80  }
  0x53   : > { %1705 = vmatprep.subr.mxu0 %v335_v3  ;;  %s2123_s16 = smov 112   ;;  %s2124_s14 = smov 48  }
  0x54   : > { %1706 = vmatpush3.msra.mxu0 %v335_v3  ;;  %s2125_s20 = smov 72   ;;  %s2126_s27 = smov 104  }
  0x55   : > { %1707 = vmatprep.subr.mxu0 %v334_v4  ;;  %s2127_s1 = smov 40   ;;  %s2128_s29 = smov 8  }
  0x56   : > { %1708 = vmatpush3.msra.mxu0 %v334_v4 }
  0x57   : > { %1710 = vmatmul.mubr.msk.f32.vlgmr.msra.gmra.mxu0 %vm345_vm0, %v333_v5 }
 0x117   : > { %v1711_v7 = vpop.f32.mrf.mxu0 }
 0x118   : > { %v424_v8 = vadd.f32 %v1711_v7, %v1610_v6 }
 0x119   : > { %v418_v9 = vpop.f32.mrf.mxu0 }
 0x11a   : > { %429 = vst.msk [vmem:[#allocation2 + $0x8] sm:$0xff] %vm427_vm1, %v424_v8  ;;  %v419_v10 = vadd.f32 %v1610_v6, %v418_v9 }
 0x11c   : > { %428 = vst.msk [vmem:[#allocation2] sm:$0xff] %vm427_vm1, %v419_v10 }
 0x121   : > { %v2319_v11 = vld [vmem:[#allocation2 + $0x8] sm:$0xff] }
 0x122   : > { %443 = vrot.lane.b32.xlu0 %v2319_v11, %s2117_s7 }
 0x123   : > { %v2322_v12 = vld [vmem:[#allocation2] sm:$0xff] }
 0x124   : > { %1716 = vmatprep.mubr.msk.f32.mxu1 %vm445_vm2, %v2322_v12 }
 0x126   : > { %441 = vrot.lane.b32.xlu0 %v2322_v12, %s2117_s7  ;;  %s2129_s7 = smov 16  }
 0x194   : > { %v444_v13 = vpop.permute.xlu0 %443 }
 0x195   : > { %1712 = vmatprep.subr.msk.mxu1 %vm445_vm2, %v444_v13 }
 0x196   : > { %1713 = vmatpush3.xpose.msk.msra.mxu1 %vm445_vm2, %v444_v13 }
 0x198   : > { %v442_v14 = vpop.permute.xlu0 %441 }
 0x199   : > { %1714 = vmatprep.subr.msk.mxu1 %vm445_vm2, %v442_v14 }
 0x19a   : > { %1715 = vmatpush3.xpose.msk.msra.mxu1 %vm445_vm2, %v442_v14 }
 0x19d   : > { %1717 = vmatmul.mubr.msk.f32.vlgmr.msra.gmra.mxu1 %vm445_vm2, %v2319_v11 }
 0x25d   : > { %v1718_v17 = vpop.f32.mrf.mxu1 }
 0x25e   : > { %v532_v21 = vsel %vm433_vm3, %v1718_v17, -1e+30 }
 0x25f   : > { %v522_v18 = vpop.f32.mrf.mxu1  ;;  %v537_v22 = vsel %vm533_vm4, %v532_v21, -inf }
 0x260   : > { %v531_v19 = vsel %vm433_vm3, %v522_v18, -1e+30 }
 0x261   : > { %v534_v20 = vsel %vm533_vm4, %v531_v19, -inf }
 0x262   : > { %535 = vmax.xlane.f32.xlu1 %v534_v20 }
 0x266   : > { %538 = vmax.xlane.f32.xlu1 %v537_v22 }
 0x2eb   : > { %v536_v23 = vpop.xlane.xlu1 %535 }
 0x2ec   : > { %v540_v24 = vsub.f32 %v531_v19, %v536_v23 }
 0x2ee   : > { %v542_v25 = vmul.f32 1.442695, %v540_v24 }
 0x2ef   : > { %v539_v26 = vpop.xlane.xlu1 %538 }
 0x2f0   : > { %1884 = vpow2.f32 %v542_v25  ;;  %v541_v27 = vsub.f32 %v532_v21, %v539_v26 }
 0x2f2   : > { %v544_v28 = vmul.f32 1.442695, %v541_v27 }
 0x2f4   : > { %1886 = vpow2.f32 %v544_v28 }
 0x2fd   : > { %v1885_v29 = vpop.eup %1884 }
 0x2fe   : > { %v546_v30 = vsel %vm533_vm4, %v1885_v29, 0.0 }
 0x2ff   : > { %547 = vadd.xlane.f32.xlu0 %v546_v30 }
 0x301   : > { %v1887_v31 = vpop.eup %1886 }
 0x302   : > { %v549_v32 = vsel %vm533_vm4, %v1887_v31, 0.0 }
 0x303   : > { %550 = vadd.xlane.f32.xlu1 %v549_v32 }
 0x314   : > { %560 = vrot.lane.b32.xlu1 %v2319_v11, %s2118_s9 }
 0x315   : > { %653 = vrot.lane.b32.xlu0 %v2322_v12, %s2119_s17 }
 0x318   : > { %558 = vrot.lane.b32.xlu1 %v2322_v12, %s2118_s9  ;;  %s2130_s9 = smov 24  }
 0x31c   : > { %661 = vrot.lane.b32.xlu1 %v2319_v11, %s2120_s28 }
 0x320   : > { %659 = vrot.lane.b32.xlu1 %v2322_v12, %s2120_s28  ;;  %s1455_s28 = sshll.u32 %s2351_s13, 4  ;;  %s2456_s28 = int_to_ptr.vmem [resolvable:$true] %s1455_s28 }
 0x324   : > { %655 = vrot.lane.b32.xlu1 %v2319_v11, %s2119_s17  ;;  %s1656_s17 = sshll.u32 %s2102_s24, 10 }
 0x388   : > { %v548_v33 = vpop.xlane.xlu0 %547 }
 0x389   : > { %1888 = vrcp.f32 %v548_v33 }
 0x38c   : > { %v551_v34 = vpop.xlane.xlu1 %550  ;;  %v654_v43 = vpop.permute.xlu0 %653 }
 0x38d   : > { %1890 = vrcp.f32 %v551_v34 }
 0x390   : > { %v561_v35 = vpop.permute.xlu1 %560 }
 0x391   : > { %1719 = vmatprep.subr.mxu1 %v561_v35 }
 0x392   : > { %1720 = vmatpush3.msra.mxu1 %v561_v35 }
 0x394   : > { %v559_v36 = vpop.permute.xlu1 %558 }
 0x395   : > { %1721 = vmatprep.subr.mxu1 %v559_v36 }
 0x396   : > { %v1889_v37 = vpop.eup %1888  ;;  %1722 = vmatpush3.msra.mxu1 %v559_v36 }
 0x397   : > { %v554_v38 = vmul.f32 %v1889_v37, %v1885_v29 }
 0x398   : > { %v662_v39 = vpop.permute.xlu1 %661 }
 0x399   : > { %556 = vst.msk [vmem:[%s2351_s13] sm:$0xff] %vm533_vm4, %v554_v38  ;;  %1723 = vmatprep.mubr.msk.f32.mxu1 %vm533_vm4, %v554_v38  ;;  %1726 = vmatprep.subr.msk.mxu1 %vm445_vm2, %v662_v39 }
 0x39a   : > { %v1891_v40 = vpop.eup %1890 }
 0x39b   : > { %v555_v41 = vmul.f32 %v1891_v40, %v1887_v31 }
 0x39c   : > { %v660_v42 = vpop.permute.xlu1 %659 }
 0x39d   : > { %557 = vst.msk [vmem:[%s2351_s13 + $0x8] sm:$0xff] %vm533_vm4, %v555_v41  ;;  %1724 = vmatmul.mubr.msk.f32.vlgmr.msra.gmra.mxu1 %vm533_vm4, %v555_v41 }
 0x39e   : > { %1727 = vmatpush3.xpose.msk.msra.mxu1 %vm445_vm2, %v662_v39  ;;  %1730 = vmatprep.mubr.msk.f32.mxu1 %vm445_vm2, %v654_v43 }
 0x39f   : > { %1728 = vmatprep.subr.msk.mxu1 %vm445_vm2, %v660_v42 }
 0x3a0   : > { %v656_v44 = vpop.permute.xlu1 %655 }
 0x3a2   : > { %1729 = vmatpush3.xpose.msk.msra.mxu1 %vm445_vm2, %v660_v42 }
 0x3a5   : > { %1731 = vmatmul.mubr.msk.f32.vlgmr.msra.gmra.mxu1 %vm445_vm2, %v656_v44 }
 0x45d   : > { %v1725_v45 = vpop.f32.mrf.mxu1 }
 0x45e   : > { %646 = vst.msk [vmem:[#allocation3 + $0x8] sm:$0xff] %vm445_vm2, %v1725_v45 }
 0x45f   : > { %v636_v46 = vpop.f32.mrf.mxu1 }
 0x460   : > { %645 = vst.msk [vmem:[#allocation3] sm:$0xff] %vm445_vm2, %v636_v46 }
 0x465   : > { %v1732_v47 = vpop.f32.mrf.mxu1 }
 0x466   : > { %v747_v48 = vsel %vm433_vm3, %v1732_v47, -1e+30 }
 0x467   : > { %v737_v49 = vpop.f32.mrf.mxu1  ;;  %v751_v50 = vsel %vm533_vm4, %v747_v48, -inf }
 0x468   : > { %v746_v51 = vsel %vm433_vm3, %v737_v49, -1e+30  ;;  %752 = vmax.xlane.f32.xlu0 %v751_v50 }
 0x469   : > { %v748_v52 = vsel %vm533_vm4, %v746_v51, -inf }
 0x46a   : > { %749 = vmax.xlane.f32.xlu1 %v748_v52 }
 0x47b   : > { %775 = vrot.lane.b32.xlu1 %v2319_v11, %s2121_s11 }
 0x47e   : > { %773 = vrot.lane.b32.xlu0 %v2322_v12, %s2121_s11 }
 0x47f   : > { %885 = vrot.lane.b32.xlu1 %v2319_v11, %s2122_s18 }
 0x482   : > { %877 = vrot.lane.b32.xlu0 %v2322_v12, %s2123_s16 }
 0x483   : > { %883 = vrot.lane.b32.xlu1 %v2322_v12, %s2122_s18  ;;  %s2454_s18 = scalar_lea.hbm %s2552_s6, %s1656_s17 }
 0x4f1   : > { %v753_v53 = vpop.xlane.xlu0 %752 }
 0x4f2   : > { %v755_v54 = vsub.f32 %v747_v48, %v753_v53 }
 0x4f3   : > { %v750_v55 = vpop.xlane.xlu1 %749 }
 0x4f4   : > { %v758_v56 = vmul.f32 1.442695, %v755_v54  ;;  %v754_v57 = vsub.f32 %v746_v51, %v750_v55 }
 0x4f5   : > { %v774_v60 = vpop.permute.xlu0 %773 }
 0x4f6   : > { %1892 = vpow2.f32 %v758_v56  ;;  %v756_v58 = vmul.f32 1.442695, %v754_v57 }
 0x4f7   : > { %v776_v59 = vpop.permute.xlu1 %775 }
 0x4f8   : > { %1894 = vpow2.f32 %v756_v58  ;;  %1733 = vmatprep.subr.mxu0 %v776_v59 }
 0x4f9   : > { %1734 = vmatpush3.msra.mxu0 %v776_v59  ;;  %v878_v9 = vpop.permute.xlu0 %877 }
 0x4fa   : > { %1735 = vmatprep.subr.mxu0 %v774_v60 }
 0x4fb   : > { %1736 = vmatpush3.msra.mxu0 %v774_v60  ;;  %v886_v61 = vpop.permute.xlu1 %885 }
 0x4fc   : > { %1740 = vmatprep.subr.msk.mxu0 %vm445_vm2, %v886_v61 }
 0x4ff   : > { %v884_v2 = vpop.permute.xlu1 %883 }
 0x503   : > { %v1893_v62 = vpop.eup %1892 }
 0x504   : > { %v763_v63 = vsel %vm533_vm4, %v1893_v62, 0.0 }
 0x505   : > { %v1895_v0 = vpop.eup %1894  ;;  %764 = vadd.xlane.f32.xlu1 %v763_v63 }
 0x506   : > { %v760_v1 = vsel %vm533_vm4, %v1895_v0, 0.0 }
 0x509   : > { %761 = vadd.xlane.f32.xlu1 %v760_v1 }
 0x51a   : > { %879 = vrot.lane.b32.xlu1 %v2319_v11, %s2123_s16  ;;  %s1422_s16 = scalar_lea.sflag [#allocation12], %s2300_s15 }
 0x58e   : > { %v765_v3 = vpop.xlane.xlu1 %764 }
 0x58f   : > { %1896 = vrcp.f32 %v765_v3 }
 0x592   : > { %v762_v4 = vpop.xlane.xlu1 %761 }
 0x593   : > { %1898 = vrcp.f32 %v762_v4 }
 0x596   : > { %v880_v10 = vpop.permute.xlu1 %879 }
 0x59c   : > { %v1897_v5 = vpop.eup %1896 }
 0x59d   : > { %v769_v6 = vmul.f32 %v1897_v5, %v1893_v62 }
 0x59f   : > { %1624 = vst.msk [vmem:[%s2351_s13 + $0x18] sm:$0xff] %vm533_vm4, %v769_v6 }
 0x5a0   : > { %v1899_v7 = vpop.eup %1898 }
 0x5a1   : > { %v768_v8 = vmul.f32 %v1899_v7, %v1895_v0 }
 0x5a3   : > { %1623 = vst.msk [vmem:[%s2351_s13 + $0x10] sm:$0xff] %vm533_vm4, %v768_v8  ;;  %1737 = vmatprep.mubr.msk.f32.mxu0 %vm533_vm4, %v768_v8  ;;  %v1323_v8 = vld [vmem:[#allocation9 + $0x10] sm:$0xff] }
 0x5a4   : > { %1738 = vmatmul.mubr.msk.f32.vlgmr.msra.gmra.mxu0 %vm533_vm4, %v769_v6 }
 0x5a5   : > { %1741 = vmatpush3.xpose.msk.msra.mxu0 %vm445_vm2, %v886_v61  ;;  %1744 = vmatprep.mubr.msk.f32.mxu0 %vm445_vm2, %v878_v9  ;;  %v1322_v9 = vld [vmem:[#allocation9 + $0x8] sm:$0xff] }
 0x5a6   : > { %1742 = vmatprep.subr.msk.mxu0 %vm445_vm2, %v884_v2 }
 0x5a9   : > { %1743 = vmatpush3.xpose.msk.msra.mxu0 %vm445_vm2, %v884_v2 }
 0x5ac   : > { %1745 = vmatmul.mubr.msk.f32.vlgmr.msra.gmra.mxu0 %vm445_vm2, %v880_v10  ;;  %v1321_v10 = vld [vmem:[#allocation9] sm:$0xff] }
 0x664   : > { %v2393_v13 = vpop.f32.mrf.mxu0 }
 0x666   : > { %v2395_v14 = vpop.f32.mrf.mxu0 }
 0x66c   : > { %v1746_v15 = vpop.f32.mrf.mxu0 }
 0x66d   : > { %v971_v17 = vsel %vm433_vm3, %v1746_v15, -1e+30 }
 0x66e   : > { %v961_v18 = vpop.f32.mrf.mxu0  ;;  %v975_v19 = vsel %vm533_vm4, %v971_v17, -inf }
 0x66f   : > { %v970_v20 = vsel %vm433_vm3, %v961_v18, -1e+30  ;;  %976 = vmax.xlane.f32.xlu1 %v975_v19 }
 0x670   : > { %v972_v21 = vsel %vm533_vm4, %v970_v20, -inf }
 0x671   : > { %973 = vmax.xlane.f32.xlu0 %v972_v21 }
 0x680   : > { %999 = vrot.lane.b32.xlu1 %v2319_v11, %s2124_s14 }
 0x684   : > { %1109 = vrot.lane.b32.xlu1 %v2319_v11, %s2125_s20 }
 0x688   : > { %1107 = vrot.lane.b32.xlu1 %v2322_v12, %s2125_s20  ;;  %s2131_s20 = smov [#allocation11]  }
 0x68c   : > { %1103 = vrot.lane.b32.xlu1 %v2319_v11, %s2126_s27 }
 0x6f8   : > { %v977_v22 = vpop.xlane.xlu1 %976 }
 0x6f9   : > { %v979_v23 = vsub.f32 %v971_v17, %v977_v22 }
 0x6fa   : > { %v974_v24 = vpop.xlane.xlu0 %973 }
 0x6fb   : > { %v982_v25 = vmul.f32 1.442695, %v979_v23  ;;  %v978_v26 = vsub.f32 %v970_v20, %v974_v24 }
 0x6fc   : > { %v1000_v27 = vpop.permute.xlu1 %999 }
 0x6fd   : > { %1900 = vpow2.f32 %v982_v25  ;;  %v980_v28 = vmul.f32 1.442695, %v978_v26  ;;  %1747 = vmatprep.subr.mxu1 %v1000_v27 }
 0x6fe   : > { %1748 = vmatpush3.msra.mxu1 %v1000_v27 }
 0x6ff   : > { %1902 = vpow2.f32 %v980_v28 }
 0x700   : > { %v1110_v36 = vpop.permute.xlu1 %1109 }
 0x704   : > { %v1108_v42 = vpop.permute.xlu1 %1107 }
 0x708   : > { %v1104_v43 = vpop.permute.xlu1 %1103 }
 0x70a   : > { %v1901_v29 = vpop.eup %1900 }
 0x70b   : > { %v987_v30 = vsel %vm533_vm4, %v1901_v29, 0.0 }
 0x70c   : > { %v1903_v31 = vpop.eup %1902  ;;  %988 = vadd.xlane.f32.xlu0 %v987_v30 }
 0x70d   : > { %v984_v32 = vsel %vm533_vm4, %v1903_v31, 0.0 }
 0x710   : > { %985 = vadd.xlane.f32.xlu0 %v984_v32 }
 0x726   : > { %997 = vrot.lane.b32.xlu0 %v2322_v12, %s2124_s14  ;;  %s1996_s14 = scalar_lea.vmem %s2456_s28, 1024 }
 0x727   : > { %p1997_p1 = scmp.ne.s32.totalorder %s2456_s28, %s1996_s14 }
 0x729   : > { %p1998_p4 = pnand %p1997_p1, %p2270_p3 }
 0x72a   : > { %1101 = vrot.lane.b32.xlu0 %v2322_v12, %s2126_s27  ;;  %s2000_s27 = sshll.u32 %s2131_s20, 4  ;;  %s2001_s27 = int_to_ptr.vmem [resolvable:$false] %s2000_s27 }
 0x72b   : > { %p1999_p6 = pneg %p1998_p4  ;;  %p2003_p8 = scmp.lt.s32.totalorder %s2456_s28, %s2001_s27 }
 0x795   : > { %v989_v33 = vpop.xlane.xlu0 %988 }
 0x796   : > { %1904 = vrcp.f32 %v989_v33 }
 0x799   : > { %v986_v34 = vpop.xlane.xlu0 %985 }
 0x79a   : > { %1906 = vrcp.f32 %v986_v34 }
 0x79d   : > { %v998_v35 = vpop.permute.xlu0 %997 }
 0x79e   : > { %1749 = vmatprep.subr.mxu1 %v998_v35 }
 0x79f   : > { %1750 = vmatpush3.msra.mxu1 %v998_v35 }
 0x7a0   : > { %1754 = vmatprep.subr.msk.mxu1 %vm445_vm2, %v1110_v36 }
 0x7a1   : > { %v1102_v41 = vpop.permute.xlu0 %1101 }
 0x7a3   : > { %v1905_v37 = vpop.eup %1904 }
 0x7a4   : > { %v993_v38 = vmul.f32 %v1905_v37, %v1901_v29 }
 0x7a6   : > { %1632 = vst.msk [vmem:[%s2351_s13 + $0x28] sm:$0xff] %vm533_vm4, %v993_v38 }
 0x7a7   : > { %v1907_v39 = vpop.eup %1906 }
 0x7a8   : > { %v992_v40 = vmul.f32 %v1907_v39, %v1903_v31 }
 0x7aa   : > { %1631 = vst.msk [vmem:[%s2351_s13 + $0x20] sm:$0xff] %vm533_vm4, %v992_v40  ;;  %1751 = vmatprep.mubr.msk.f32.mxu1 %vm533_vm4, %v992_v40 }
 0x7ab   : > { %1752 = vmatmul.mubr.msk.f32.vlgmr.msra.gmra.mxu1 %vm533_vm4, %v993_v38 }
 0x7ac   : > { %1755 = vmatpush3.xpose.msk.msra.mxu1 %vm445_vm2, %v1110_v36  ;;  %1758 = vmatprep.mubr.msk.f32.mxu1 %vm445_vm2, %v1102_v41 }
 0x7ad   : > { %1756 = vmatprep.subr.msk.mxu1 %vm445_vm2, %v1108_v42 }
 0x7b0   : > { %1757 = vmatpush3.xpose.msk.msra.mxu1 %vm445_vm2, %v1108_v42 }
 0x7b3   : > { %1759 = vmatmul.mubr.msk.f32.vlgmr.msra.gmra.mxu1 %vm445_vm2, %v1104_v43 }
 0x86b   : > { %v1753_v44 = vpop.f32.mrf.mxu1 }
 0x86d   : > { %v1075_v45 = vpop.f32.mrf.mxu1 }
 0x873   : > { %v1760_v46 = vpop.f32.mrf.mxu1 }
 0x874   : > { %v1195_v47 = vsel %vm433_vm3, %v1760_v46, -1e+30 }
 0x875   : > { %v1185_v48 = vpop.f32.mrf.mxu1  ;;  %v1199_v49 = vsel %vm533_vm4, %v1195_v47, -inf }
 0x876   : > { %v1194_v50 = vsel %vm433_vm3, %v1185_v48, -1e+30  ;;  %1200 = vmax.xlane.f32.xlu1 %v1199_v49 }
 0x877   : > { %v1196_v51 = vsel %vm533_vm4, %v1194_v50, -inf }
 0x878   : > { %1197 = vmax.xlane.f32.xlu0 %v1196_v51 }
 0x887   : > { %1223 = vrot.lane.b32.xlu1 %v2319_v11, %s2127_s1 }
 0x88b   : > { %862 = vrot.lane.b32.xlu1 %v2395_v14, %s2128_s29 }
 0x88f   : > { %864 = vrot.lane.b32.xlu1 %v2393_v13, %s2128_s29 }
 0x893   : > { %1088 = vrot.lane.b32.xlu1 %v1753_v44, %s2129_s7 }
 0x8ff   : > { %v1201_v52 = vpop.xlane.xlu1 %1200 }
 0x900   : > { %v1203_v16 = vsub.f32 %v1195_v47, %v1201_v52 }
 0x901   : > { %v1198_v53 = vpop.xlane.xlu0 %1197 }
 0x902   : > { %v1206_v54 = vmul.f32 1.442695, %v1203_v16  ;;  %v1202_v55 = vsub.f32 %v1194_v50, %v1198_v53 }
 0x903   : > { %v1224_v56 = vpop.permute.xlu1 %1223 }
 0x904   : > { %1908 = vpow2.f32 %v1206_v54  ;;  %v1204_v57 = vmul.f32 1.442695, %v1202_v55  ;;  %1761 = vmatprep.subr.mxu0 %v1224_v56 }
 0x905   : > { %1762 = vmatpush3.msra.mxu0 %v1224_v56 }
 0x906   : > { %1910 = vpow2.f32 %v1204_v57 }
 0x907   : > { %v863_v11 = vpop.permute.xlu1 %862 }
 0x908   : > { %869 = vst.msk [vmem:[#allocation3] sm:$0xff] %vm868_vm5, %v863_v11 }
 0x90b   : > { %v865_v58 = vpop.permute.xlu1 %864 }
 0x90c   : > { %870 = vst.msk [vmem:[#allocation3 + $0x8] sm:$0xff] %vm868_vm5, %v865_v58 }
 0x90f   : > { %v1089_v59 = vpop.permute.xlu1 %1088 }
 0x910   : > { %1094 = vst.msk [vmem:[#allocation3 + $0x8] sm:$0xff] %vm1092_vm6, %v1089_v59 }
 0x911   : > { %v1909_v60 = vpop.eup %1908 }
 0x912   : > { %v1211_v61 = vsel %vm533_vm4, %v1909_v60, 0.0 }
 0x913   : > { %v1911_v62 = vpop.eup %1910  ;;  %1212 = vadd.xlane.f32.xlu0 %v1211_v61 }
 0x914   : > { %v1208_v63 = vsel %vm533_vm4, %v1911_v62, 0.0 }
 0x917   : > { %1209 = vadd.xlane.f32.xlu0 %v1208_v63 }
 0x92d   : > { %1221 = vrot.lane.b32.xlu0 %v2322_v12, %s2127_s1  ;;  %v1324_v12 = vld [vmem:[#allocation9 + $0x18] sm:$0xff] }
 0x931   : > { %1086 = vrot.lane.b32.xlu0 %v1075_v45, %s2129_s7 }
 0x99c   : > { %v1213_v0 = vpop.xlane.xlu0 %1212 }
 0x99d   : > { %1912 = vrcp.f32 %v1213_v0 }
 0x9a0   : > { %v1210_v1 = vpop.xlane.xlu0 %1209 }
 0x9a1   : > { %1914 = vrcp.f32 %v1210_v1 }
 0x9a4   : > { %v1222_v2 = vpop.permute.xlu0 %1221 }
 0x9a5   : > { %1763 = vmatprep.subr.mxu0 %v1222_v2 }
 0x9a6   : > { %1764 = vmatpush3.msra.mxu0 %v1222_v2 }
 0x9a7   : > { %1768 = vmatprep.subr.mxu0 %v1324_v12 }
 0x9a8   : > { %v1087_v3 = vpop.permute.xlu0 %1086 }
 0x9a9   : > { %1093 = vst.msk [vmem:[#allocation3] sm:$0xff] %vm1092_vm6, %v1087_v3 }
 0x9aa   : > { %v1913_v4 = vpop.eup %1912 }
 0x9ab   : > { %v1217_v5 = vmul.f32 %v1913_v4, %v1909_v60 }
 0x9ad   : > { %1640 = vst.msk [vmem:[%s2351_s13 + $0x38] sm:$0xff] %vm533_vm4, %v1217_v5 }
 0x9ae   : > { %v1915_v6 = vpop.eup %1914 }
 0x9af   : > { %v1216_v7 = vmul.f32 %v1915_v6, %v1911_v62 }
 0x9b1   : > { %1639 = vst.msk [vmem:[%s2351_s13 + $0x30] sm:$0xff] %vm533_vm4, %v1216_v7  ;;  %1765 = vmatprep.mubr.msk.f32.mxu0 %vm533_vm4, %v1216_v7  ;;  %s2002_s13 = scalar_lea.vmem %s2001_s27, 2048 }
 0x9b2   : > { %1766 = vmatmul.mubr.msk.f32.vlgmr.msra.gmra.mxu0 %vm533_vm4, %v1217_v5  ;;  %p2004_p10 = scmp.lt.s32.totalorder %s2002_s13, %s1996_s14 }
 0x9b3   : > { %1769 = vmatpush3.msra.mxu0 %v1324_v12 }
 0x9b4   : > { %1770 = vmatprep.subr.mxu0 %v1323_v8  ;;  %p2005_p11 = por %p2004_p10, %p2003_p8 }
 0x9b5   : > { %1771 = vmatpush3.msra.mxu0 %v1323_v8 }
 0x9b6   : > { %1772 = vmatprep.subr.mxu0 %v1322_v9  ;;  %p2006_p2 = pnand %p2005_p11, %p1999_p6 }
 0x9b7   : > { %1773 = vmatpush3.msra.mxu0 %v1322_v9 }
 0x9b8   : > { %1774 = vmatprep.subr.mxu0 %v1321_v10 }
 0x9b9   : > { %1775 = vmatpush3.msra.mxu0 %v1321_v10 }
 0xa72   : > { %v1767_v13 = vpop.f32.mrf.mxu0 }
 0xa73   : > { %1312 = vrot.lane.b32.xlu1 %v1767_v13, %s2130_s9 }
 0xa74   : > { %v1299_v14 = vpop.f32.mrf.mxu0 }
 0xa75   : > { %1310 = vrot.lane.b32.xlu0 %v1299_v14, %s2130_s9 }
 0xae5   : > { %v1313_v15 = vpop.permute.xlu1 %1312 }
 0xae6   : > { %1318 = vst.msk [vmem:[#allocation3 + $0x8] sm:$0xff] %vm1316_vm7, %v1313_v15 }
 0xae7   : > { %v1311_v17 = vpop.permute.xlu0 %1310 }
 0xae8   : > { %1317 = vst.msk [vmem:[#allocation3] sm:$0xff] %vm1316_vm7, %v1311_v17 }
 0xaed   : > { %v1320_v19 = vld [vmem:[#allocation3 + $0x8] sm:$0xff] }
 0xaef   : > { %v1319_v18 = vld [vmem:[#allocation3] sm:$0xff] }
 0xaf0   : > { %1776 = vmatprep.mubr.msk.f32.mxu0 %vm345_vm0, %v1319_v18 }
 0xaf1   : > { %1777 = vmatmul.mubr.msk.f32.vlgmr.msra.gmra.mxu0 %vm345_vm0, %v1320_v19 }
 0xaf2   : > { %2009 = shalt.err (!%p2006_p2)
}
 0xaf3   : > { %s2010_s1 = scalar_lea.hbm %s2454_s18, 1024  ;;  %s2014_s17 = scalar_lea.hbm %s2552_s6, 2048 }
 0xaf4   : > { %p2011_p9 = scmp.ne.s32.totalorder %s2454_s18, %s2010_s1  ;;  %p2015_p0 = scmp.lt.s32.totalorder %s2454_s18, %s2552_s6 }
 0xaf5   : > { %p2016_p7 = scmp.lt.s32.totalorder %s2014_s17, %s2010_s1 }
 0xaf6   : > { %p2012_p12 = pnand %p2011_p9, %p2270_p3 }
 0xaf7   : > { %p2017_p5 = por %p2016_p7, %p2015_p0 }
 0xaf8   : > { %p2013_p13 = pneg %p2012_p12 }
 0xafa   : > { %p2018_p1 = pnand %p2017_p5, %p2013_p13 }
 0xafc   : > { %2021 = shalt.err (!%p2018_p1)
}
 0xafd   : > { %s2132_s14 = smov 128   ;;  %v1643_v20 = vld [vmem:[%s2550_s4] ss:$0 sm:$0xff]  ;;  %s318_s13 = scalar_lea.vmem [#allocation10], %s1605_s3 }
 0xafe   : > { %1790 = dma.vmem_to_hbm [thread:$0]  (%p2270_p3), %s2456_s28, 1024, %s2454_s18, %s1422_s16, %s2132_s14, %s2132_s14, %s2128_s29  }
 0xaff   : > { %s1437_s1 = sshll.u32 %s318_s13, 4  ;;  %s1655_s7 = sshll.u32 %s2102_s24, 8  ;;  %s2490_s1 = int_to_ptr.vmem [resolvable:$true] %s1437_s1 }
 0xb00   : > { %s2496_s16 = scalar_lea.hbm %s2551_s5, %s1655_s7  ;;  %s1417_s3 = scalar_lea.sflag [#allocation6], %s2300_s15 }
 0xb01   : > { %s2022_s9 = scalar_lea.vmem %s2490_s1, 256  ;;  %s2133_s24 = smov [#allocation10]  }
 0xb02   : > { %p2023_p4 = scmp.ne.s32.totalorder %s2490_s1, %s2022_s9  ;;  %s2026_s17 = sshll.u32 %s2133_s24, 4  ;;  %s2027_s17 = int_to_ptr.vmem [resolvable:$false] %s2026_s17 }
 0xb03   : > { %s2028_s30 = scalar_lea.vmem %s2027_s17, 512  ;;  %p2029_p10 = scmp.lt.s32.totalorder %s2490_s1, %s2027_s17 }
 0xb04   : > { %p2024_p6 = pnand %p2023_p4, %p2270_p3  ;;  %p2030_p11 = scmp.lt.s32.totalorder %s2028_s30, %s2022_s9 }
 0xb06   : > { %p2025_p8 = pneg %p2024_p6  ;;  %p2031_p2 = por %p2030_p11, %p2029_p10 }
 0xb08   : > { %p2032_p9 = pnand %p2031_p2, %p2025_p8 }
 0xbb1   : > { %v1778_v21 = vpop.f32.mrf.mxu0 }
 0xbb2   : > { %v1411_v22 = vadd.f32 %v1778_v21, %v1643_v20 }
 0xbb3   : > { %v1405_v23 = vpop.f32.mrf.mxu0 }
 0xbb4   : > { %1415 = vst.msk [vmem:[%s318_s13 + $0x8] sm:$0xff] %vm345_vm0, %v1411_v22  ;;  %v1406_v24 = vadd.f32 %v1643_v20, %v1405_v23 }
 0xbb6   : > { %1414 = vst.msk [vmem:[%s318_s13] sm:$0xff] %vm345_vm0, %v1406_v24 }
 0xbb7   : > { %2035 = shalt.err (!%p2032_p9)
}
 0xbb8   : > { %s2036_s11 = scalar_lea.hbm %s2496_s16, 256  ;;  %s2040_s27 = scalar_lea.hbm %s2551_s5, 512 }
 0xbb9   : > { %p2037_p12 = scmp.ne.s32.totalorder %s2496_s16, %s2036_s11  ;;  %p2041_p7 = scmp.lt.s32.totalorder %s2496_s16, %s2551_s5 }
 0xbba   : > { %p2042_p5 = scmp.lt.s32.totalorder %s2040_s27, %s2036_s11 }
 0xbbb   : > { %p2038_p13 = pnand %p2037_p12, %p2270_p3 }
 0xbbc   : > { %p2043_p1 = por %p2042_p5, %p2041_p7 }
 0xbbd   : > { %p2039_p0 = pneg %p2038_p13 }
 0xbbf   : > { %p2044_p4 = pnand %p2043_p1, %p2039_p0 }
 0xbc1   : > { %2047 = shalt.err (!%p2044_p4)
}
 0xbc2   : > { %1789 = dma.vmem_to_hbm [thread:$0]  (%p2270_p3), %s2490_s1, 256, %s2496_s16, %s1417_s3, %s2132_s14, %s2132_s14, %s2128_s29  }
 0xbc3 PF: > { %s1470_s28 = sand.u32 1, %s2090_s21   ;;  %p2569_p6 = scmp.ne.s32.totalorder %s2560_s8, 0 }
 0xbc4   : > { %p2570_p8 = scmp.ge.s32.totalorder %s2110_s26, 2  ;;  %s1471_s18 = scalar_lea.sflag [#allocation6], %s1470_s28 }
 0xbc6   : > { %p1805_p10 = pnand %p2570_p8, %p2569_p6 }
 0xbc8   : > { %p1806_p11 = pneg %p1805_p10 }
 0xbca   : > { %2081 = dma.done.wait (%p1806_p11), %s1471_s18, 256  }
 0xbcb   : > { %2083 = vsyncadd (%p1806_p11), %s1471_s18, 4294967040  ;;  %s1480_s9 = scalar_lea.sflag [#allocation12], %s1470_s28 }
 0xbcc   : > { %2085 = dma.done.wait (%p1806_p11), %s1480_s9, 1024  }
 0xbcd   : > { %2087 = vsyncadd (%p1806_p11), %s1480_s9, 4294966272  ;;  %s27_s26 = sadd.s32 1, %s2110_s26   ;;  %s2571_s21 = smov %s2094_s22 }
 0xbce   : > { %p24_p2 = scmp.ge.s32.totalorder %s27_s26, 4   ;;  %s2572_s22 = smov %s2098_s23 }
 0xbcf   : > { %s2573_s23 = smov %s2279_s19  ;;  %s2574_s24 = smov %s2106_s25 }
 0xbd0   : > { %s2575_s25 = smov %s2577_s10  ;;  %26 = sbr.rel (!%p24_p2) target bundleno = 12 (0xc), region = 118 }
 0xbd5   :  { %1485 = vsyncpa [#allocation5], 1 }
 0xbd6   :  { %1487 = vsyncpa [#allocation5 + $0x1], 1 }
 0xbd7   :  { %1488 = vsyncpa [#allocation8], 1 }
 0xbd8   :  { %1489 = vsyncpa [#allocation6], 1 }
 0xbd9   :  { %1491 = vsyncpa [#allocation6 + $0x1], 1 }
 0xbda   :  { %1492 = vsyncpa [#allocation12], 1 }
 0xbdb   :  { %1494 = vsyncpa [#allocation12 + $0x1], 1 }

</bundles_post_ra>
